<compile_context>
chip_gen: v5e
topology: v5e:2x2
jax: 0.10.0
libtpu: 0.0.40
codegen_flags: <defaults>
</compile_context>

<pallas_src>
import functools

import jax
import jax.numpy as jnp
from jax.experimental import pallas as pl
from jax.experimental.pallas import tpu as pltpu


def _round_up(x, m):
    return (x + m - 1) // m * m


def _sepconv_kernel(x_ref, wb_ref, o_ref, *, k, dilation, c, h1, apply_relu):
    # x_ref:  (1, Hp, L)        zero-padded input, W and C flattened onto lanes;
    #                           L = lane-padded Wp*C, a multiple of 128.
    # wb_ref: (k*k + 1, 1, L)   rows 0..k*k-1: BN-scaled taps tiled along W;
    #                           row  k*k:     folded BN shift tiled along W.
    # o_ref:  (1, h1, L)        dense (stride-1) conv rows; only lanes < w1*C valid.
    l = x_ref.shape[2]
    n_taps = k * k

    x = x_ref[0].astype(jnp.float32)                          # (Hp, L)

    # kx tap offsets as hoisted lane rotations: k-1 rolls total (XLU slot), done once
    # on the full (Hp, L) tile.  Wrapped lanes land at lane >= L - (k-1)*dil*C >= w1*C
    # and the zero lane-padding only feeds lanes >= Wp*C - (k-1)*dil*C >= w1*C, so both
    # stay outside the wrapper's valid-lane crop (asserted in the wrapper).
    x_rolled = [x]
    for kx in range(1, k):
        lane_shift = kx * dilation * c
        x_rolled.append(pltpu.roll(x, l - lane_shift, axis=1))

    # Single hoisted broadcast of all taps + shift (avoids k*k+1 broadcast_in_dim ops).
    taps = jnp.broadcast_to(wb_ref[...].astype(jnp.float32), (n_taps + 1, h1, l))

    # Accumulator initialized with the folded BN shift (no zeros pass, no scale mul).
    acc = taps[n_taps]
    for ky in range(k):
        r0 = ky * dilation
        for kx in range(k):
            # ky offset: static sublane slice of the pre-rolled array.
            x_tap = x_rolled[kx][r0:r0 + h1, :]
            acc = acc + x_tap * taps[ky * k + kx]

    if apply_relu:
        acc = jnp.maximum(acc, 0.0)
    o_ref[0] = acc.astype(o_ref.dtype)                        # full-width (lane-dense) store


def basic_sep_conv_pallas(x_nchw, weight, gamma, beta, running_mean, running_var,
                          *, kernel_size, stride=1, padding=0, dilation=1,
                          eps=1e-5, relu=True):
    """x_nchw: (N, C, H, W); weight: (C, 1, k, k) PyTorch depthwise layout."""
    n, c, h, w = x_nchw.shape
    k = kernel_size
    h_out = (h + 2 * padding - dilation * (k - 1) - 1) // stride + 1
    w_out = (w + 2 * padding - dilation * (k - 1) - 1) // stride + 1
    hp, wp = h + 2 * padding, w + 2 * padding
    h1 = hp - dilation * (k - 1)            # dense (stride-1) valid-output rows
    w1 = wp - dilation * (k - 1)            # dense (stride-1) valid-output cols
    l = _round_up(wp * c, 128)              # lane-dense (multiple-of-128) lane extent
    wp_pad = l // c

    # Safety of the in-kernel roll-wrap / zero lane-padding w.r.t. the valid crop.
    assert l % 128 == 0 and l % c == 0
    assert l - (k - 1) * dilation * c >= w1 * c
    assert wp * c - (k - 1) * dilation * c >= w1 * c

    # Glue (fuses under jit): NCHW -> NHWC, zero-pad H and W (right W pad also brings
    # W*C up to the 128-multiple lane extent), flatten W,C onto the lane axis.
    x_nhwc = jnp.transpose(x_nchw, (0, 2, 3, 1))
    x_pad = jnp.pad(x_nhwc, ((0, 0), (padding, padding),
                             (padding, wp_pad - w - padding), (0, 0)))
    x_flat = x_pad.reshape(n, hp, l)

    # Fold BN (inference) into the depthwise weights + a per-channel shift.
    inv_std = 1.0 / jnp.sqrt(running_var.astype(jnp.float32) + eps)
    scale = gamma.astype(jnp.float32) * inv_std                        # (C,)
    shift = beta.astype(jnp.float32) - running_mean.astype(jnp.float32) * scale
    w_taps = jnp.transpose(weight[:, 0, :, :], (1, 2, 0)).reshape(k * k, c)
    w_scaled = w_taps.astype(jnp.float32) * scale[None, :]             # (k*k, C)
    wb = jnp.concatenate([w_scaled, shift[None, :]], axis=0)           # (k*k+1, C)
    wb_flat = jnp.tile(wb, (1, wp_pad)).astype(jnp.float32)[:, None, :]  # (k*k+1, 1, L)

    kernel = functools.partial(_sepconv_kernel, k=k, dilation=dilation, c=c,
                               h1=h1, apply_relu=relu)

    flops = 2 * n * h1 * w1 * c * k * k
    bytes_accessed = int(x_flat.size * 4 + wb_flat.size * 4 + n * h1 * l * 4)

    out_flat = pl.pallas_call(
        kernel,
        out_shape=jax.ShapeDtypeStruct((n, h1, l), x_nchw.dtype),
        grid_spec=pltpu.PrefetchScalarGridSpec(
            num_scalar_prefetch=0,
            grid=(n,),                       # N>=2 -> >=2 parallel steps (v7x 2 TCs)
            in_specs=[
                pl.BlockSpec((1, hp, l), lambda b: (b, 0, 0)),
                pl.BlockSpec((k * k + 1, 1, l), lambda b: (0, 0, 0)),   # resident const
            ],
            out_specs=pl.BlockSpec((1, h1, l), lambda b: (b, 0, 0)),
        ),
        compiler_params=pltpu.CompilerParams(
            dimension_semantics=("parallel",),
            vmem_limit_bytes=32 * 1024 * 1024),
        cost_estimate=pl.CostEstimate(flops=flops, transcendentals=0,
                                      bytes_accessed=bytes_accessed),
    )(x_flat, wb_flat)

    # Glue (fuses under jit): crop valid lanes/rows, restore NCHW, apply stride.
    out = out_flat[:, :, :w1 * c].reshape(n, h1, w1, c)
    if stride > 1:
        out = out[:, ::stride, ::stride, :]
    out = out[:, :h_out, :w_out, :]
    return jnp.transpose(out, (0, 3, 1, 2))


def _reference(x_nchw, weight, gamma, beta, running_mean, running_var,
               *, kernel_size, stride, padding, dilation, eps=1e-5, relu=True):
    c = x_nchw.shape[1]
    out = jax.lax.conv_general_dilated(
        x_nchw.astype(jnp.float32), weight.astype(jnp.float32),
        window_strides=(stride, stride),
        padding=[(padding, padding), (padding, padding)],
        rhs_dilation=(dilation, dilation),
        dimension_numbers=("NCHW", "OIHW", "NCHW"),
        feature_group_count=c,
        precision=jax.lax.Precision.HIGHEST)
    scale = (gamma / jnp.sqrt(running_var + eps)).reshape(1, c, 1, 1)
    shift = (beta - running_mean * gamma / jnp.sqrt(running_var + eps)).reshape(1, c, 1, 1)
    out = out * scale + shift
    if relu:
        out = jnp.maximum(out, 0.0)
    return out


if __name__ == "__main__":
    # BasicSepConv(in_planes=4, kernel_size=3, stride=1, padding=1)
    N, C, H, W = 2, 4, 16, 16
    K, STRIDE, PAD, DIL = 3, 1, 1, 1

    key = jax.random.PRNGKey(0)
    kx, kw, kg, kb, km, kv = jax.random.split(key, 6)
    x = jax.random.normal(kx, (N, C, H, W), dtype=jnp.float32)
    # Depthwise conv weight, PyTorch layout (out=C, in/groups=1, k, k).
    weight = jax.random.normal(kw, (C, 1, K, K), dtype=jnp.float32) * 0.1
    # Non-trivial BatchNorm2d parameters / running stats (exercise the BN fold).
    gamma = 1.0 + 0.1 * jax.random.normal(kg, (C,), dtype=jnp.float32)
    beta = 0.1 * jax.random.normal(kb, (C,), dtype=jnp.float32)
    running_mean = 0.05 * jax.random.normal(km, (C,), dtype=jnp.float32)
    running_var = jax.random.uniform(kv, (C,), dtype=jnp.float32,
                                     minval=0.5, maxval=1.5)

    # jit the wrapper so the small pre/post glue ops fuse into a couple of XLA
    # fusions around the pallas_call (launch overhead was the dominant cost).
    fwd = jax.jit(functools.partial(
        basic_sep_conv_pallas,
        kernel_size=K, stride=STRIDE, padding=PAD, dilation=DIL))

    out = fwd(x, weight, gamma, beta, running_mean, running_var)
    out = jax.block_until_ready(out)

    ref = _reference(x, weight, gamma, beta, running_mean, running_var,
                     kernel_size=K, stride=STRIDE, padding=PAD, dilation=DIL)
    assert out.shape == (N, C, H, W)
    assert jnp.allclose(out, ref, atol=1e-4, rtol=1e-4), "mismatch vs reference"
    print("KERNEL_OK")
</pallas_src>

<mosaic_0001>
module attributes {stable_mosaic.version = 11 : i64} {
  func.func @_sepconv_kernel(%arg0: i32, %arg1: memref<1x18x128xf32, #tpu.memory_space<vmem>>, %arg2: memref<10x1x128xf32, #tpu.memory_space<vmem>>, %arg3: memref<1x16x128xf32, #tpu.memory_space<vmem>>) attributes {dimension_semantics = [#tpu.dimension_semantics<parallel>], iteration_bounds = array<i64: 2>, scalar_prefetch = 0 : i64, scratch_operands = 0 : i64, tpu.core_type = #tpu.core_type<tc>, window_params = [{transform_indices = @transform_0, window_bounds = array<i64: 1, 18, 128>}, {pipeline_mode = #tpu.pipeline_mode<synchronous>, transform_indices = @transform_1, window_bounds = array<i64: 10, 1, 128>}, {transform_indices = @transform_2, window_bounds = array<i64: 1, 16, 128>}]} {
    %c0 = arith.constant 0 : index
    %c0_0 = arith.constant 0 : index
    %c0_1 = arith.constant 0 : index
    %0 = vector.load %arg1[%c0, %c0_0, %c0_1] : memref<1x18x128xf32, #tpu.memory_space<vmem>>, vector<1x18x128xf32>
    %1 = vector.shape_cast %0 : vector<1x18x128xf32> to vector<18x128xf32>
    %c124_i32 = arith.constant 124 : i32
    %2 = tpu.dynamic_rotate %1 by %c124_i32 dim 1 : vector<18x128xf32>, i32 -> vector<18x128xf32>
    %c120_i32 = arith.constant 120 : i32
    %3 = tpu.dynamic_rotate %1 by %c120_i32 dim 1 : vector<18x128xf32>, i32 -> vector<18x128xf32>
    %c0_2 = arith.constant 0 : index
    %c0_3 = arith.constant 0 : index
    %c0_4 = arith.constant 0 : index
    %4 = vector.load %arg2[%c0_2, %c0_3, %c0_4] : memref<10x1x128xf32, #tpu.memory_space<vmem>>, vector<10x1x128xf32>
    %5 = vector.shape_cast %4 : vector<10x1x128xf32> to vector<10x1x128xf32>
    %6 = vector.broadcast %5 : vector<10x1x128xf32> to vector<10x16x128xf32>
    %7 = vector.extract_strided_slice %6 {offsets = [9, 0, 0], sizes = [1, 16, 128], strides = [1, 1, 1]} : vector<10x16x128xf32> to vector<1x16x128xf32>
    %8 = vector.shape_cast %7 : vector<1x16x128xf32> to vector<16x128xf32>
    %9 = vector.extract_strided_slice %1 {offsets = [0, 0], sizes = [16, 128], strides = [1, 1]} : vector<18x128xf32> to vector<16x128xf32>
    %10 = vector.extract_strided_slice %6 {offsets = [0, 0, 0], sizes = [1, 16, 128], strides = [1, 1, 1]} : vector<10x16x128xf32> to vector<1x16x128xf32>
    %11 = vector.shape_cast %10 : vector<1x16x128xf32> to vector<16x128xf32>
    %12 = arith.mulf %9, %11 : vector<16x128xf32>
    %13 = arith.addf %8, %12 : vector<16x128xf32>
    %14 = vector.extract_strided_slice %2 {offsets = [0, 0], sizes = [16, 128], strides = [1, 1]} : vector<18x128xf32> to vector<16x128xf32>
    %15 = vector.extract_strided_slice %6 {offsets = [1, 0, 0], sizes = [1, 16, 128], strides = [1, 1, 1]} : vector<10x16x128xf32> to vector<1x16x128xf32>
    %16 = vector.shape_cast %15 : vector<1x16x128xf32> to vector<16x128xf32>
    %17 = arith.mulf %14, %16 : vector<16x128xf32>
    %18 = arith.addf %13, %17 : vector<16x128xf32>
    %19 = vector.extract_strided_slice %3 {offsets = [0, 0], sizes = [16, 128], strides = [1, 1]} : vector<18x128xf32> to vector<16x128xf32>
    %20 = vector.extract_strided_slice %6 {offsets = [2, 0, 0], sizes = [1, 16, 128], strides = [1, 1, 1]} : vector<10x16x128xf32> to vector<1x16x128xf32>
    %21 = vector.shape_cast %20 : vector<1x16x128xf32> to vector<16x128xf32>
    %22 = arith.mulf %19, %21 : vector<16x128xf32>
    %23 = arith.addf %18, %22 : vector<16x128xf32>
    %24 = vector.extract_strided_slice %1 {offsets = [1, 0], sizes = [16, 128], strides = [1, 1]} : vector<18x128xf32> to vector<16x128xf32>
    %25 = vector.extract_strided_slice %6 {offsets = [3, 0, 0], sizes = [1, 16, 128], strides = [1, 1, 1]} : vector<10x16x128xf32> to vector<1x16x128xf32>
    %26 = vector.shape_cast %25 : vector<1x16x128xf32> to vector<16x128xf32>
    %27 = arith.mulf %24, %26 : vector<16x128xf32>
    %28 = arith.addf %23, %27 : vector<16x128xf32>
    %29 = vector.extract_strided_slice %2 {offsets = [1, 0], sizes = [16, 128], strides = [1, 1]} : vector<18x128xf32> to vector<16x128xf32>
    %30 = vector.extract_strided_slice %6 {offsets = [4, 0, 0], sizes = [1, 16, 128], strides = [1, 1, 1]} : vector<10x16x128xf32> to vector<1x16x128xf32>
    %31 = vector.shape_cast %30 : vector<1x16x128xf32> to vector<16x128xf32>
    %32 = arith.mulf %29, %31 : vector<16x128xf32>
    %33 = arith.addf %28, %32 : vector<16x128xf32>
    %34 = vector.extract_strided_slice %3 {offsets = [1, 0], sizes = [16, 128], strides = [1, 1]} : vector<18x128xf32> to vector<16x128xf32>
    %35 = vector.extract_strided_slice %6 {offsets = [5, 0, 0], sizes = [1, 16, 128], strides = [1, 1, 1]} : vector<10x16x128xf32> to vector<1x16x128xf32>
    %36 = vector.shape_cast %35 : vector<1x16x128xf32> to vector<16x128xf32>
    %37 = arith.mulf %34, %36 : vector<16x128xf32>
    %38 = arith.addf %33, %37 : vector<16x128xf32>
    %39 = vector.extract_strided_slice %1 {offsets = [2, 0], sizes = [16, 128], strides = [1, 1]} : vector<18x128xf32> to vector<16x128xf32>
    %40 = vector.extract_strided_slice %6 {offsets = [6, 0, 0], sizes = [1, 16, 128], strides = [1, 1, 1]} : vector<10x16x128xf32> to vector<1x16x128xf32>
    %41 = vector.shape_cast %40 : vector<1x16x128xf32> to vector<16x128xf32>
    %42 = arith.mulf %39, %41 : vector<16x128xf32>
    %43 = arith.addf %38, %42 : vector<16x128xf32>
    %44 = vector.extract_strided_slice %2 {offsets = [2, 0], sizes = [16, 128], strides = [1, 1]} : vector<18x128xf32> to vector<16x128xf32>
    %45 = vector.extract_strided_slice %6 {offsets = [7, 0, 0], sizes = [1, 16, 128], strides = [1, 1, 1]} : vector<10x16x128xf32> to vector<1x16x128xf32>
    %46 = vector.shape_cast %45 : vector<1x16x128xf32> to vector<16x128xf32>
    %47 = arith.mulf %44, %46 : vector<16x128xf32>
    %48 = arith.addf %43, %47 : vector<16x128xf32>
    %49 = vector.extract_strided_slice %3 {offsets = [2, 0], sizes = [16, 128], strides = [1, 1]} : vector<18x128xf32> to vector<16x128xf32>
    %50 = vector.extract_strided_slice %6 {offsets = [8, 0, 0], sizes = [1, 16, 128], strides = [1, 1, 1]} : vector<10x16x128xf32> to vector<1x16x128xf32>
    %51 = vector.shape_cast %50 : vector<1x16x128xf32> to vector<16x128xf32>
    %52 = arith.mulf %49, %51 : vector<16x128xf32>
    %53 = arith.addf %48, %52 : vector<16x128xf32>
    %cst = arith.constant 0.000000e+00 : f32
    %54 = vector.broadcast %cst : f32 to vector<16x128xf32>
    %55 = arith.maximumf %53, %54 : vector<16x128xf32>
    %c0_5 = arith.constant 0 : index
    %c0_6 = arith.constant 0 : index
    %c0_7 = arith.constant 0 : index
    %56 = vector.load %arg3[%c0_5, %c0_6, %c0_7] : memref<1x16x128xf32, #tpu.memory_space<vmem>>, vector<1x16x128xf32>
    %57 = vector.shape_cast %56 : vector<1x16x128xf32> to vector<16x128xf32>
    %58 = vector.shape_cast %55 : vector<16x128xf32> to vector<1x16x128xf32>
    tpu.vector_store %arg3[%c0_5, %c0_6, %c0_7], %58 {strides = array<i32>} : memref<1x16x128xf32, #tpu.memory_space<vmem>>, vector<1x16x128xf32>,
    return
  }
  func.func @transform_0(%arg0: i32) -> (i32, i32, i32) {
    %c0_i32 = arith.constant 0 : i32
    %c0_i32_0 = arith.constant 0 : i32
    %c0_i32_1 = arith.constant 0 : i32
    return %arg0, %c0_i32, %c0_i32_0 : i32, i32, i32
  }
  func.func @transform_1(%arg0: i32) -> (i32, i32, i32) {
    %c0_i32 = arith.constant 0 : i32
    %c0_i32_0 = arith.constant 0 : i32
    %c0_i32_1 = arith.constant 0 : i32
    %c0_i32_2 = arith.constant 0 : i32
    return %c0_i32, %c0_i32_0, %c0_i32_1 : i32, i32, i32
  }
  func.func @transform_2(%arg0: i32) -> (i32, i32, i32) {
    %c0_i32 = arith.constant 0 : i32
    %c0_i32_0 = arith.constant 0 : i32
    %c0_i32_1 = arith.constant 0 : i32
    return %arg0, %c0_i32, %c0_i32_0 : i32, i32, i32
  }
}

</mosaic_0001>

<bundles_post_ra>
// kernel: basic_sep_conv_pallas.1
= control target key start
LH: loop header
LB: loop body
LE: loop exit
PB: predicated region body
PF: predicated region fallthrough
CT: control target
= control target key end

     0   :  { %s419_s9 = smov 0   ;;  %s482_s0 = inlined_call_operand.vmem [shape: f32[2,18,128], index: 0, kind: input, shape index: {}]   ;;  %s483_s1 = inlined_call_operand.vmem [shape: f32[10,1,128], index: 1, kind: input, shape index: {}]   ;;  %s484_s2 = inlined_call_operand.vmem [shape: f32[2,16,128], index: 2, kind: output, shape index: {}]  }
   0x1 LB: > { %s362_s10 = sadd.s32 4294967295, %s400_s9   ;;  %p366_p0 = scmp.ge.s32.totalorder %s400_s9, 1  ;;  %s400_s9 = sphi %s419_s9, %s12_s9  }
   0x2   : > { %p112_p1 = scmp.lt.s32.totalorder %s400_s9, 3 }
   0x4   : > { %p113_p2 = pnand %p366_p0, %p112_p1 }
   0x5   : > { %p134_p3 = scmp.lt.s32.totalorder (!%p113_p2), %s362_s10, 1  ;;  %s402_s15 = smov (!%p113_p2), 120  }
   0x6   : > { %116 = sbr.rel (%p113_p2) target bundleno = 160 (0xa0), region = 28  ;;  %s403_s16 = smov (!%p113_p2), 124  }
   0xb   : > { %s486_s10 = smov (!%p134_p3, %s362_s10), 1  ;;  %v390_v3 = vld [vmem:[%s483_s1] ss:$0 sm:$0xff]  ;;  %v389_v5 = vld [vmem:[%s483_s1 + $0x9] ss:$0 sm:$0xff]  ;;  %vm202_vm0 = vcmask 1046528  }
   0xc   : > { %s373_s11 = smul.u32 24, %s486_s10  ;;  %v391_v6 = vld [vmem:[%s483_s1 + $0x1] ss:$0 sm:$0xff]  ;;  %v384_v8 = vld [vmem:[%s483_s1 + $0x3] ss:$0 sm:$0xff]  ;;  %vm257_vm1 = vcmask 1045504  }
   0xd   : > { %v385_v9 = vld [vmem:[%s483_s1 + $0x6] ss:$0 sm:$0xff]  ;;  %v386_v12 = vld [vmem:[%s483_s1 + $0x2] ss:$0 sm:$0xff]  ;;  %v392_v21 = vld [vmem:[%s483_s1 + $0x4] ss:$0 sm:$0xff] }
   0xe   : > { %s138_s14 = scalar_lea.vmem %s482_s0, %s373_s11  ;;  %v387_v28 = vld [vmem:[%s483_s1 + $0x5] ss:$0 sm:$0xff]  ;;  %v393_v38 = vld [vmem:[%s483_s1 + $0x7] ss:$0 sm:$0xff]  ;;  %v388_v50 = vld [vmem:[%s483_s1 + $0x8] ss:$0 sm:$0xff] }
   0xf   : > { %v144_v0 = vld [vmem:[%s138_s14] sm:$0xff]  ;;  %v146_v1 = vld [vmem:[%s138_s14 + $0x10] sm:$0x3]  ;;  %v145_v2 = vld [vmem:[%s138_s14 + $0x8] sm:$0xff]  ;;  %s372_s11 = sshll.u32 %s486_s10, 4 }
  0x10   : > { %153 = vrot.lane.b32.xlu1 %v144_v0, %s402_s15  ;;  %147 = vrot.lane.b32.xlu0 %v144_v0, %s403_s16  ;;  %v175_v7 = vmul.f32 %v390_v3, %v144_v0  ;;  %v196_v15 = vmul.f32 %v384_v8, %v144_v0  ;;  %v197_v16 = vmul.f32 %v384_v8, %v145_v2  ;;  %s143_s14 = scalar_lea.vmem %s484_s2, %s372_s11 }
  0x11   : > { %151 = vrot.lane.b32.xlu2 %v146_v1, %s403_s16  ;;  %v251_v17 = vmul.f32 %v385_v9, %v144_v0  ;;  %v198_v18 = vmul.f32 %v384_v8, %v146_v1  ;;  %v176_v19 = vmul.f32 %v390_v3, %v145_v2  ;;  %v252_v20 = vmul.f32 %v385_v9, %v145_v2 }
  0x12   : > { %v177_v13 = vadd.f32 %v389_v5, %v175_v7  ;;  %v203_v25 = vrot.slane %v196_v15, 1  ;;  %v204_v26 = vrot.slane %v197_v16, 1  ;;  %v253_v27 = vmul.f32 %v385_v9, %v146_v1 }
  0x13   : > { %v258_v29 = vrot.slane %v251_v17, 2  ;;  %v206_v30 = vrot.slane %v198_v18, 1  ;;  %v178_v31 = vadd.f32 %v389_v5, %v176_v19  ;;  %v259_v32 = vrot.slane %v252_v20, 2 }
  0x14   : > { %v261_v43 = vrot.slane %v253_v27, 2  ;;  %v205_v45 = vsel %vm202_vm0, %v203_v25, %v204_v26 }
  0x15   : > { %v207_v48 = vsel %vm202_vm0, %v204_v26, %v206_v30 }
  0x18   : > { %155 = vrot.lane.b32.xlu1 %v145_v2, %s402_s15  ;;  %149 = vrot.lane.b32.xlu0 %v145_v2, %s403_s16 }
  0x19   : > { %157 = vrot.lane.b32.xlu2 %v146_v1, %s402_s15  ;;  %v260_v1 = vsel %vm257_vm1, %v258_v29, %v259_v32 }
  0x6b   : > { %v152_v4 = vpop.permute.xlu2 %151 }
  0x6c   : > { %v217_v34 = vmul.f32 %v392_v21, %v152_v4  ;;  %v272_v47 = vmul.f32 %v393_v38, %v152_v4 }
  0x6e   : > { %v224_v56 = vrot.slane %v217_v34, 1  ;;  %v279_v17 = vrot.slane %v272_v47, 2 }
  0x73   : > { %v158_v24 = vpop.permute.xlu2 %157 }
  0x74   : > { %v235_v37 = vmul.f32 %v387_v28, %v158_v24  ;;  %v290_v2 = vmul.f32 %v388_v50, %v158_v24 }
  0x76   : > { %v242_v58 = vrot.slane %v235_v37, 1  ;;  %v297_v18 = vrot.slane %v290_v2, 2 }
  0x82   : > { %v154_v10 = vpop.permute.xlu1 %153  ;;  %v148_v11 = vpop.permute.xlu0 %147 }
  0x83   : > { %v182_v14 = vmul.f32 %v391_v6, %v148_v11  ;;  %v189_v22 = vmul.f32 %v386_v12, %v154_v10  ;;  %v215_v33 = vmul.f32 %v392_v21, %v148_v11  ;;  %v233_v44 = vmul.f32 %v387_v28, %v154_v10 }
  0x84   : > { %v270_v60 = vmul.f32 %v393_v38, %v148_v11  ;;  %v288_v3 = vmul.f32 %v388_v50, %v154_v10 }
  0x85   : > { %v184_v23 = vadd.f32 %v182_v14, %v177_v13  ;;  %v221_v51 = vrot.slane %v215_v33, 1  ;;  %v239_v59 = vrot.slane %v233_v44, 1  ;;  %v262_v13 = vsel %vm257_vm1, %v259_v32, %v261_v43 }
  0x86   : > { %v276_v9 = vrot.slane %v270_v60, 2  ;;  %v294_v16 = vrot.slane %v288_v3, 2 }
  0x87   : > { %v191_v39 = vadd.f32 %v189_v22, %v184_v23 }
  0x89   : > { %v210_v55 = vadd.f32 %v205_v45, %v191_v39 }
  0x8a   : > { %v156_v35 = vpop.permute.xlu1 %155  ;;  %v150_v36 = vpop.permute.xlu0 %149 }
  0x8b   : > { %v190_v40 = vmul.f32 %v386_v12, %v156_v35  ;;  %v234_v41 = vmul.f32 %v387_v28, %v156_v35  ;;  %v183_v42 = vmul.f32 %v391_v6, %v150_v36  ;;  %v216_v46 = vmul.f32 %v392_v21, %v150_v36 }
  0x8c   : > { %v271_v54 = vmul.f32 %v393_v38, %v150_v36  ;;  %v289_v61 = vmul.f32 %v388_v50, %v156_v35 }
  0x8d   : > { %v185_v49 = vadd.f32 %v183_v42, %v178_v31  ;;  %v240_v52 = vrot.slane %v234_v41, 1  ;;  %v222_v53 = vrot.slane %v216_v46, 1 }
  0x8e   : > { %v277_v6 = vrot.slane %v271_v54, 2  ;;  %v295_v12 = vrot.slane %v289_v61, 2 }
  0x8f   : > { %v192_v57 = vadd.f32 %v190_v40, %v185_v49  ;;  %v223_v62 = vsel %vm202_vm0, %v221_v51, %v222_v53  ;;  %v241_v4 = vsel %vm202_vm0, %v239_v59, %v240_v52  ;;  %v225_v5 = vsel %vm202_vm0, %v222_v53, %v224_v56 }
  0x90   : > { %v228_v0 = vadd.f32 %v223_v62, %v210_v55  ;;  %v243_v11 = vsel %vm202_vm0, %v240_v52, %v242_v58  ;;  %v278_v10 = vsel %vm257_vm1, %v276_v9, %v277_v6  ;;  %v296_v21 = vsel %vm257_vm1, %v294_v16, %v295_v12 }
  0x91   : > { %v211_v63 = vadd.f32 %v207_v48, %v192_v57  ;;  %v280_v22 = vsel %vm257_vm1, %v277_v6, %v279_v17  ;;  %v298_v25 = vsel %vm257_vm1, %v295_v12, %v297_v18 }
  0x92   : > { %v246_v8 = vadd.f32 %v241_v4, %v228_v0 }
  0x93   : > { %v229_v7 = vadd.f32 %v225_v5, %v211_v63 }
  0x94   : > { %v265_v14 = vadd.f32 %v260_v1, %v246_v8 }
  0x95   : > { %v247_v15 = vadd.f32 %v243_v11, %v229_v7 }
  0x96   : > { %v283_v19 = vadd.f32 %v278_v10, %v265_v14 }
  0x97   : > { %v266_v20 = vadd.f32 %v262_v13, %v247_v15 }
  0x98   : > { %v301_v23 = vadd.f32 %v296_v21, %v283_v19 }
  0x99   : > { %v284_v24 = vadd.f32 %v280_v22, %v266_v20 }
  0x9a   : > { %v303_v26 = vmax.f32 %v301_v23, 0.0 }
  0x9b   : > { %v302_v27 = vadd.f32 %v298_v25, %v284_v24 }
  0x9c   : > { %305 = vst [vmem:[%s143_s14] sm:$0xff] %v303_v26 }
  0x9d   : > { %v304_v28 = vmax.f32 %v302_v27, 0.0 }
  0x9f   : > { %306 = vst [vmem:[%s143_s14 + $0x8] sm:$0xff] %v304_v28 }
  0xa0 PF: > { %s12_s9 = sadd.s32 1, %s400_s9  }
  0xa1   : > { %p9_p4 = scmp.ge.s32.totalorder %s12_s9, 4  }
  0xa3   :  { %11 = sbr.rel (!%p9_p4) target bundleno = 1 (0x1), region = 58 }

</bundles_post_ra>
